<compile_context>
chip_gen: v5e
topology: v5e:2x2
jax: 0.10.0
libtpu: 0.0.40
codegen_flags: <defaults>
</compile_context>

<pallas_src>
import jax
import jax.numpy as jnp
from jax.experimental import pallas as pl
from jax.experimental.pallas import tpu as pltpu


def _round_up(x, m):
    return ((x + m - 1) // m) * m


def _make_kernel(tb, S, S_pad, D_pad):
    def kernel(enc_ref, hidp_ref, w1e_ref, w2_ref, out_ref):
        # enc_ref:  (tb, S_pad, D_pad)   encoder-output tile
        # hidp_ref: (tb, D_pad) f32      precomputed hidden_state @ W1_hid + b1
        # w1e_ref:  (D_pad, D_pad)       encoder half of W1
        # w2_ref:   (1, D_pad) f32       Linear2 weight as a lane row
        # out_ref:  (tb, D_pad)          context slab
        enc = enc_ref[...]
        enc_f32 = enc.astype(jnp.float32)

        # Linear1 (encoder half): one (tb*S_pad, D_pad) @ (D_pad, D_pad) MXU matmul.
        a = enc.reshape(tb * S_pad, D_pad)
        z = jnp.dot(a, w1e_ref[...], preferred_element_type=jnp.float32)
        z = z.reshape(tb, S_pad, D_pad)

        # Add the hoisted hidden projection (+ bias), broadcast over the sequence axis.
        t = jnp.tanh(z + hidp_ref[...][:, None, :])               # (tb, S_pad, D_pad) f32

        # Linear2 (no bias) as a VPU multiply + lane reduce over D -> lane-major (tb, S).
        e = jnp.sum(t * w2_ref[...][None, :, :], axis=-1)         # (tb, S_pad) f32

        if S_pad > S:  # static: mask padded sequence positions out of the softmax
            s_ids = jax.lax.broadcasted_iota(jnp.int32, (tb, S_pad), 1)
            e = jnp.where(s_ids < S, e, -jnp.inf)

        # Numerically stable softmax over the sequence (lane) axis.
        m = jnp.max(e, axis=-1, keepdims=True)
        p = jnp.exp(e - m)
        alpha = p * pl.reciprocal(jnp.sum(p, axis=-1, keepdims=True), approx=True)

        # context[b, d] = sum_s alpha[b, s] * enc[b, s, d]  (VPU mul + sublane reduce)
        ctx = jnp.sum(alpha[:, :, None] * enc_f32, axis=1)        # (tb, D_pad)
        out_ref[...] = ctx.astype(out_ref.dtype)

    return kernel


def attention_forward(hidden_state, encoder_outputs, w1, b1, w2, *, mxu_dtype=None):
    """hidden_state (B,D), encoder_outputs (B,S,D), w1 (2D,D), b1 (D,), w2 (D,1)."""
    B, S, D = encoder_outputs.shape
    assert hidden_state.shape == (B, D)
    assert w1.shape == (2 * D, D) and b1.shape == (D,) and w2.shape == (D, 1)
    out_dtype = encoder_outputs.dtype

    # Hoisted hidden projection: hidden_state @ W1_hid + b1 as one XLA matmul (f32).
    w1_enc = w1[:D, :]
    w1_hid = w1[D:, :]
    hid_proj = (hidden_state.astype(jnp.float32) @ w1_hid.astype(jnp.float32)
                + b1.astype(jnp.float32))                                   # (B, D)

    # Pad to TPU-friendly tiles: lane dim -> multiple of 128, sequence -> multiple of 8.
    D_pad = _round_up(D, 128)
    S_pad = _round_up(S, 8)

    # Batch tile: multiple of 8 sublanes, aim for >= 128 matmul rows per grid step,
    # capped so the double-buffered encoder block stays well under VMEM limits; keep
    # >= 2 grid steps so the "parallel" batch axis can shard across v7x's 2 TensorCores.
    tb = max(8, _round_up(pl.cdiv(128, S_pad), 8))
    itemsize = jnp.dtype(mxu_dtype if mxu_dtype is not None else encoder_outputs.dtype).itemsize
    while tb > 8 and 2 * tb * S_pad * D_pad * itemsize > (8 << 20):
        tb -= 8
    num_steps = max(2, pl.cdiv(B, tb))
    B_pad = num_steps * tb

    enc_p = jnp.zeros((B_pad, S_pad, D_pad), encoder_outputs.dtype)
    enc_p = enc_p.at[:B, :S, :D].set(encoder_outputs)
    hidp_p = jnp.zeros((B_pad, D_pad), jnp.float32).at[:B, :D].set(hid_proj)
    w1e_p = jnp.zeros((D_pad, D_pad), w1.dtype).at[:D, :D].set(w1_enc)
    w2_p = jnp.zeros((1, D_pad), jnp.float32).at[0, :D].set(w2[:, 0].astype(jnp.float32))

    if mxu_dtype is not None:  # e.g. jnp.bfloat16 on v6e/v7x: halves DMA, 2x MXU rate
        enc_p = enc_p.astype(mxu_dtype)
        w1e_p = w1e_p.astype(mxu_dtype)

    kernel = _make_kernel(tb, S, S_pad, D_pad)

    out = pl.pallas_call(
        kernel,
        out_shape=jax.ShapeDtypeStruct((B_pad, D_pad), out_dtype),
        grid_spec=pltpu.PrefetchScalarGridSpec(
            num_scalar_prefetch=0,
            grid=(num_steps,),
            in_specs=[
                pl.BlockSpec((tb, S_pad, D_pad), lambda i: (i, 0, 0)),  # encoder tile
                pl.BlockSpec((tb, D_pad), lambda i: (i, 0)),            # hidden projection
                pl.BlockSpec((D_pad, D_pad), lambda i: (0, 0)),         # W1 (encoder half)
                pl.BlockSpec((1, D_pad), lambda i: (0, 0)),             # w2 row
            ],
            out_specs=pl.BlockSpec((tb, D_pad), lambda i: (i, 0)),
        ),
        compiler_params=pltpu.CompilerParams(
            dimension_semantics=("parallel",),
        ),
    )(enc_p, hidp_p, w1e_p, w2_p)

    return out[:B, :D]


def reference_forward(hidden_state, encoder_outputs, w1, b1, w2):
    B, S, D = encoder_outputs.shape
    hid_rep = jnp.repeat(hidden_state[:, None, :], S, axis=1)           # (B,S,D)
    inputs = jnp.concatenate([encoder_outputs, hid_rep], axis=2)        # (B,S,2D)
    inputs = inputs.reshape(-1, 2 * D)
    o = jnp.tanh(inputs @ w1 + b1) @ w2                                 # (B*S, 1)
    e = o.reshape(B, S)
    alpha = jax.nn.softmax(e, axis=1)
    return jnp.einsum("bs,bsd->bd", alpha, encoder_outputs)


if __name__ == "__main__":
    B, S, D = 2, 8, 32

    key = jax.random.PRNGKey(0)
    k_hid, k_enc, k_w1, k_b1, k_w2 = jax.random.split(key, 5)

    hidden_state = jax.random.normal(k_hid, (B, D), dtype=jnp.float32)
    encoder_outputs = jax.random.normal(k_enc, (B, S, D), dtype=jnp.float32)

    # Xavier-normal-style init (matches nn.Linear(dim*2, dim) / nn.Linear(dim, 1, bias=False))
    w1 = jax.random.normal(k_w1, (2 * D, D), dtype=jnp.float32) * jnp.sqrt(2.0 / (2 * D + D))
    b1 = 0.1 * jax.random.normal(k_b1, (D,), dtype=jnp.float32)
    w2 = jax.random.normal(k_w2, (D, 1), dtype=jnp.float32) * jnp.sqrt(2.0 / (D + 1))

    ctx = attention_forward(hidden_state, encoder_outputs, w1, b1, w2)
    jax.block_until_ready(ctx)

    ref = reference_forward(hidden_state, encoder_outputs, w1, b1, w2)
    assert ctx.shape == (B, D)
    err = float(jnp.max(jnp.abs(ctx - ref)))
    # approx=True softmax reciprocal is the only non-bit-exact f32 step -> modest tolerance
    assert jnp.allclose(ctx, ref, atol=2e-3, rtol=2e-3), f"mismatch: max abs err {err}"
    print("KERNEL_OK")
</pallas_src>

<mosaic_0001>
module attributes {stable_mosaic.version = 11 : i64} {
  func.func @kernel(%arg0: i32, %arg1: memref<16x8x128xf32, #tpu.memory_space<vmem>>, %arg2: memref<16x128xf32, #tpu.memory_space<vmem>>, %arg3: memref<128x128xf32, #tpu.memory_space<vmem>>, %arg4: memref<1x128xf32, #tpu.memory_space<vmem>>, %arg5: memref<16x128xf32, #tpu.memory_space<vmem>>) attributes {dimension_semantics = [#tpu.dimension_semantics<parallel>], iteration_bounds = array<i64: 2>, scalar_prefetch = 0 : i64, scratch_operands = 0 : i64, tpu.core_type = #tpu.core_type<tc>, window_params = [{transform_indices = @transform_0, window_bounds = array<i64: 16, 8, 128>}, {transform_indices = @transform_1, window_bounds = array<i64: 16, 128>}, {pipeline_mode = #tpu.pipeline_mode<synchronous>, transform_indices = @transform_2, window_bounds = array<i64: 128, 128>}, {pipeline_mode = #tpu.pipeline_mode<synchronous>, transform_indices = @transform_3, window_bounds = array<i64: 1, 128>}, {transform_indices = @transform_4, window_bounds = array<i64: 16, 128>}]} {
    %c0 = arith.constant 0 : index
    %c0_0 = arith.constant 0 : index
    %c0_1 = arith.constant 0 : index
    %0 = vector.load %arg1[%c0, %c0_0, %c0_1] : memref<16x8x128xf32, #tpu.memory_space<vmem>>, vector<16x8x128xf32>
    %1 = vector.shape_cast %0 : vector<16x8x128xf32> to vector<128x128xf32>
    %c0_2 = arith.constant 0 : index
    %c0_3 = arith.constant 0 : index
    %2 = vector.load %arg3[%c0_2, %c0_3] : memref<128x128xf32, #tpu.memory_space<vmem>>, vector<128x128xf32>
    %cst = arith.constant dense<0.000000e+00> : vector<128x128xf32>
    %3 = tpu.matmul %1, %2, %cst {dimension_numbers = #tpu.dot_dimension_numbers<[1], [0], [0], [1], [0, 0, 1, 1], [], []>} : vector<128x128xf32>, vector<128x128xf32>, vector<128x128xf32> -> vector<128x128xf32>
    %4 = vector.shape_cast %3 : vector<128x128xf32> to vector<16x8x128xf32>
    %c0_4 = arith.constant 0 : index
    %c0_5 = arith.constant 0 : index
    %5 = vector.load %arg2[%c0_4, %c0_5] : memref<16x128xf32, #tpu.memory_space<vmem>>, vector<16x128xf32>
    %6 = vector.shape_cast %5 : vector<16x128xf32> to vector<16x1x128xf32>
    %7 = vector.broadcast %6 : vector<16x1x128xf32> to vector<16x8x128xf32>
    %8 = arith.addf %4, %7 : vector<16x8x128xf32>
    %9 = math.tanh %8 : vector<16x8x128xf32>
    %c0_6 = arith.constant 0 : index
    %c0_7 = arith.constant 0 : index
    %10 = vector.load %arg4[%c0_6, %c0_7] : memref<1x128xf32, #tpu.memory_space<vmem>>, vector<1x128xf32>
    %11 = vector.shape_cast %10 : vector<1x128xf32> to vector<1x1x128xf32>
    %12 = vector.broadcast %11 : vector<1x1x128xf32> to vector<16x8x128xf32>
    %13 = arith.mulf %9, %12 : vector<16x8x128xf32>
    %cst_8 = arith.constant dense<0.000000e+00> : vector<16x8xf32>
    %14 = vector.multi_reduction <add>, %13, %cst_8 [2] : vector<16x8x128xf32> to vector<16x8xf32>
    %cst_9 = arith.constant dense<0xFF800000> : vector<16xf32>
    %15 = vector.multi_reduction <maximumf>, %14, %cst_9 [1] : vector<16x8xf32> to vector<16xf32>
    %16 = vector.shape_cast %15 : vector<16xf32> to vector<16x1xf32>
    %17 = vector.broadcast %16 : vector<16x1xf32> to vector<16x8xf32>
    %18 = arith.subf %14, %17 : vector<16x8xf32>
    %19 = math.exp %18 : vector<16x8xf32>
    %cst_10 = arith.constant dense<0.000000e+00> : vector<16xf32>
    %20 = vector.multi_reduction <add>, %19, %cst_10 [1] : vector<16x8xf32> to vector<16xf32>
    %21 = vector.shape_cast %20 : vector<16xf32> to vector<16x1xf32>
    %22 = tpu.reciprocal %21 {approx = true} : vector<16x1xf32> -> vector<16x1xf32>
    %23 = vector.broadcast %22 : vector<16x1xf32> to vector<16x8xf32>
    %24 = arith.mulf %19, %23 : vector<16x8xf32>
    %25 = vector.shape_cast %24 : vector<16x8xf32> to vector<16x8x1xf32>
    %26 = vector.broadcast %25 : vector<16x8x1xf32> to vector<16x8x128xf32>
    %27 = arith.mulf %26, %0 : vector<16x8x128xf32>
    %cst_11 = arith.constant dense<0.000000e+00> : vector<16x128xf32>
    %28 = vector.multi_reduction <add>, %27, %cst_11 [1] : vector<16x8x128xf32> to vector<16x128xf32>
    %c0_12 = arith.constant 0 : index
    %c0_13 = arith.constant 0 : index
    %29 = vector.load %arg5[%c0_12, %c0_13] : memref<16x128xf32, #tpu.memory_space<vmem>>, vector<16x128xf32>
    tpu.vector_store %arg5[%c0_12, %c0_13], %28 {strides = array<i32>} : memref<16x128xf32, #tpu.memory_space<vmem>>, vector<16x128xf32>,
    return
  }
  func.func @transform_0(%arg0: i32) -> (i32, i32, i32) {
    %c0_i32 = arith.constant 0 : i32
    %c0_i32_0 = arith.constant 0 : i32
    %c0_i32_1 = arith.constant 0 : i32
    return %arg0, %c0_i32, %c0_i32_0 : i32, i32, i32
  }
  func.func @transform_1(%arg0: i32) -> (i32, i32) {
    %c0_i32 = arith.constant 0 : i32
    %c0_i32_0 = arith.constant 0 : i32
    return %arg0, %c0_i32 : i32, i32
  }
  func.func @transform_2(%arg0: i32) -> (i32, i32) {
    %c0_i32 = arith.constant 0 : i32
    %c0_i32_0 = arith.constant 0 : i32
    %c0_i32_1 = arith.constant 0 : i32
    return %c0_i32, %c0_i32_0 : i32, i32
  }
  func.func @transform_3(%arg0: i32) -> (i32, i32) {
    %c0_i32 = arith.constant 0 : i32
    %c0_i32_0 = arith.constant 0 : i32
    %c0_i32_1 = arith.constant 0 : i32
    return %c0_i32, %c0_i32_0 : i32, i32
  }
  func.func @transform_4(%arg0: i32) -> (i32, i32) {
    %c0_i32 = arith.constant 0 : i32
    %c0_i32_0 = arith.constant 0 : i32
    return %arg0, %c0_i32 : i32, i32
  }
}

</mosaic_0001>

<bundles_post_ra>
// kernel: tpu_custom_call.1
= control target key start
LH: loop header
LB: loop body
LE: loop exit
PB: predicated region body
PF: predicated region fallthrough
CT: control target
= control target key end

     0   :  { %s2084_s0 = inlined_call_operand.hbm [shape: f32[32,8,128], index: 0, kind: input, shape index: {}]   ;;  %s2085_s1 = inlined_call_operand.hbm [shape: f32[32,128], index: 1, kind: input, shape index: {}]   ;;  %s2086_s2 = inlined_call_operand.hbm [shape: f32[128,128], index: 2, kind: input, shape index: {}]   ;;  %s2087_s3 = inlined_call_operand.vmem [shape: f32[1,128], index: 3, kind: input, shape index: {}]   ;;  %s2088_s4 = inlined_call_operand.hbm [shape: f32[32,128], index: 4, kind: output, shape index: {}]  }
   0x1   :  { %2094 = sst [smem:[#allocation15_spill]] %s2086_s2 }
   0x2   :  { %9 = vsyncpa [#allocation3], 0 }
   0x3   :  { %11 = vsyncpa [#allocation3 + $0x1], 0 }
   0x4   :  { %12 = vsyncpa [#allocation6], 0 }
   0x5   :  { %14 = vsyncpa [#allocation6 + $0x1], 0 }
   0x6   :  { %15 = vsyncpa [#allocation4], 0 }
   0x7   :  { %17 = vsyncpa [#allocation4 + $0x1], 0  ;;  %s1564_s15 = smov 0   ;;  %s1566_s16 = smov 0  }
   0x8   :  { %s1568_s17 = smov 0   ;;  %s1570_s18 = smov 0  }
   0x9 LB: > { %2095 = sst [smem:[#allocation13_spill]] %s1527_s17  ;;  %s1585_s19 = sadd.s32 4294967295, %s1531_s18   ;;  %s1531_s18 = sphi %s1570_s18, %s2110_s18   ;;  %s1527_s17 = sphi %s1568_s17, %s2107_s17   ;;  %s1523_s16 = sphi %s1566_s16, %s2109_s16   ;;  %s1519_s15 = sphi %s1564_s15, %s2108_s15  }
   0xa   : > { %s1157_s20 = sadd.s32 4294967294, %s1531_s18   ;;  %p43_p0 = scmp.ne.s32.totalorder %s1523_s16, %s1519_s15 }
   0xb   : > { %p44_p1 = scmp.eq.s32.totalorder %s1585_s19, 0  ;;  %p135_p2 = scmp.eq.s32.totalorder %s1585_s19, 1 }
   0xc   : > { %p141_p3 = scmp.eq.s32.totalorder %s1157_s20, 1  ;;  %p1158_p5 = scmp.ge.s32.totalorder %s1531_s18, 1 }
   0xd   : > { %p1594_p4 = por %p44_p1, %p43_p0  ;;  %p148_p7 = scmp.lt.s32.totalorder %s1531_s18, 3 }
   0xe   : > { %p1599_p6 = por %p141_p3, %p43_p0  ;;  %s2098_s2 = sld [smem:[#allocation15_spill]] }
   0xf   : > { %p1607_p8 = pnand %p1158_p5, %p148_p7  ;;  %s1533_s27 = smov [#allocation7]  }
  0x10   : > { %s161_s28 = sshll.u32 %s1533_s27, 4  ;;  %s1617_s29 = sadd.s32 1, %s1531_s18   ;;  %s162_s28 = int_to_ptr.vmem [resolvable:$true] %s161_s28 }
  0x11   : > { %p1238_p9 = pneg %p1607_p8  ;;  %s2089_s30 = smov 128  }
  0x12   : > { %s2091_s5 = smov 8   ;;  %s27_s6 = ssub.s32 %s1531_s18, %s1617_s29 }
  0x13   : > { %p1239_p10 = pnand %p1238_p9, %p44_p1  ;;  %s30_s7 = sadd.s32 1, %s1527_s17 }
  0x14   : > { %s159_s25 = sshll.u32 %s2098_s2, 4  ;;  %p28_p12 = scmp.eq.s32.totalorder %s27_s6, 0  ;;  %s160_s25 = int_to_ptr.hbm [resolvable:$true] %s159_s25 }
  0x15   : > { %1241 = dma.hbm_to_vmem [thread:$0]  (!%p1239_p10), %s160_s25, 2048, %s162_s28, [#allocation6], %s2089_s30, %s2089_s30, %s2091_s5  }
  0x16   : > { %p37_p13 = scmp.ne.s32.totalorder %s1527_s17, %s1523_s16  ;;  %p38_p0 = scmp.eq.s32.totalorder %s1531_s18, 0 }
  0x17   : > { %p1254_p3 = scmp.lt.s32.totalorder %s1531_s18, 2  ;;  %s1639_s10 = sand.u32 1, %s1527_s17  }
  0x18   : > { %s1630_s8 = scalar_select %p28_p12, %s1527_s17, %s30_s7  }
  0x19   : > { %p39_p5 = por %p38_p0, %p37_p13  ;;  %p1634_p7 = por %p135_p2, %p37_p13 }
  0x1a   : > { %2100 = sst [smem:[#allocation14_spill]] %s1630_s8  ;;  %s1177_s11 = sshll.u32 %s1531_s18, 7 }
  0x1b   : > { %s1161_s12 = sshll.u32 %s1639_s10, 7  ;;  %s187_s20 = scalar_lea.hbm %s2084_s0, %s1177_s11 }
  0x1c   : > { %s188_s23 = sshll.u32 %s187_s20, 4  ;;  %s182_s24 = scalar_lea.vmem [#allocation2], %s1161_s12  ;;  %s189_s23 = int_to_ptr.hbm [resolvable:$true] %s188_s23 }
  0x1d   : > { %s190_s25 = sshll.u32 %s182_s24, 4  ;;  %p1648_p2 = pnand %p1254_p3, %p39_p5  ;;  %s191_s25 = int_to_ptr.vmem [resolvable:$true] %s190_s25 }
  0x1e   : > { %s200_s28 = sand.u32 1, %s1531_s18   ;;  %s1164_s6 = sshll.u32 %s1639_s10, 4 }
  0x1f   : > { %s179_s7 = scalar_lea.sflag [#allocation3], %s1639_s10  ;;  %s1397_s30 = sshra.s32 %s189_s23, 4  ;;  %s1398_s30 = int_to_ptr.hbm [resolvable:$true] %s1397_s30 }
  0x20   : > { %s1399_s5 = scalar_lea.hbm %s1398_s30, 128  ;;  %p1401_p10 = pneg %p1648_p2 }
  0x21   : > { %p1400_p9 = scmp.ne.s32.totalorder %s1398_s30, %s1399_s5  ;;  %s1404_s13 = scalar_lea.hbm %s2084_s0, 256 }
  0x22   : > { %p1405_p0 = scmp.lt.s32.totalorder %s1398_s30, %s2084_s0  ;;  %p1406_p3 = scmp.lt.s32.totalorder %s1404_s13, %s1399_s5 }
  0x23   : > { %p1402_p12 = pnand %p1401_p10, %p1400_p9 }
  0x24   : > { %p1407_p5 = por %p1406_p3, %p1405_p0 }
  0x25   : > { %p1403_p13 = pneg %p1402_p12 }
  0x27   : > { %p1408_p11 = pnand %p1407_p5, %p1403_p13 }
  0x29   : > { %1411 = shalt.err (!%p1408_p11)
}
  0x2a   : > { %s2103_s10 = smov 8   ;;  %s2104_s24 = smov 128  }
  0x2b   : > { %1245 = dma.hbm_to_vmem [thread:$0]  (!%p1648_p2), %s189_s23, 2048, %s191_s25, %s179_s7, %s2104_s24, %s2104_s24, %s2103_s10  }
  0x2c   : > { %s1178_s2 = sshll.u32 %s1531_s18, 4  ;;  %s204_s8 = scalar_lea.vmem [#allocation5], %s1164_s6 }
  0x2d   : > { %s212_s11 = sshll.u32 %s204_s8, 4  ;;  %s209_s14 = scalar_lea.hbm %s2085_s1, %s1178_s2  ;;  %s213_s11 = int_to_ptr.vmem [resolvable:$true] %s212_s11 }
  0x2e   : > { %s210_s30 = sshll.u32 %s209_s14, 4  ;;  %s201_s5 = scalar_lea.sflag [#allocation6], %s200_s28  ;;  %s211_s30 = int_to_ptr.hbm [resolvable:$true] %s210_s30 }
  0x2f   : > { %s1427_s13 = sshra.s32 %s211_s30, 4  ;;  %s1434_s8 = scalar_lea.hbm %s2085_s1, 32  ;;  %s1428_s13 = int_to_ptr.hbm [resolvable:$true] %s1427_s13 }
  0x30   : > { %s1429_s20 = scalar_lea.hbm %s1428_s13, 16  ;;  %p1435_p13 = scmp.lt.s32.totalorder %s1428_s13, %s2085_s1 }
  0x31   : > { %p1430_p11 = scmp.ne.s32.totalorder %s1428_s13, %s1429_s20  ;;  %p1436_p0 = scmp.lt.s32.totalorder %s1434_s8, %s1429_s20 }
  0x33   : > { %p1432_p9 = pnand %p1430_p11, %p1401_p10  ;;  %p1437_p3 = por %p1436_p0, %p1435_p13 }
  0x35   : > { %p1433_p12 = pneg %p1432_p9 }
  0x37   : > { %p1438_p5 = pnand %p1437_p3, %p1433_p12 }
  0x39   : > { %1441 = shalt.err (!%p1438_p5)
}
  0x3a   : > { %1248 = dma.hbm_to_vmem [thread:$0]  (!%p1648_p2), %s211_s30, 256, %s213_s11, %s201_s5, %s2104_s24, %s2104_s24, %s2103_s10  }
  0x3b   : > { %224 = sbr.rel (%p1607_p8) target bundleno = 997 (0x3e5), region = 36  ;;  %s1692_s2 = sand.u32 (!%p1607_p8), 1, %s1523_s16  }
  0x3c   : > { %s1168_s17 = sshll.u32 (!%p1607_p8), %s1692_s2, 7  ;;  %s227_s28 = scalar_lea.sflag (!%p1607_p8), [#allocation3], %s1692_s2 }
  0x3d   : > { %s1696_s12 = scalar_lea.vmem (!%p1607_p8), [#allocation2], %s1168_s17 }
  0x40   : > { %1502 = dma.done.wait (%p1594_p4), %s227_s28, 2048  }
  0x41   : > { %1504 = vsyncadd (%p1594_p4), %s227_s28, 4294965248  ;;  %s236_s26 = sand.u32 1, %s1585_s19   ;;  %s1169_s27 = sshll.u32 %s1692_s2, 4 }
  0x42   : > { %s237_s10 = scalar_lea.sflag [#allocation6], %s236_s26  ;;  %s1706_s24 = scalar_lea.vmem [#allocation5], %s1169_s27 }
  0x43   : > { %1506 = dma.done.wait (%p1594_p4), %s237_s10, 256  }
  0x44   : > { %1508 = vsyncadd (%p1594_p4), %s237_s10, 4294967040 }
  0x45   : > { %1510 = dma.done.wait (%p44_p1), [#allocation6], 2048  }
  0x46   : > { %1512 = vsyncadd (%p44_p1), [#allocation6], 4294965248  ;;  %v310_v0 = vld [vmem:[#allocation7 + $0x78] sm:$0xff]  ;;  %v309_v1 = vld [vmem:[#allocation7 + $0x70] sm:$0xff]  ;;  %vm544_vm0 = vcmask 1041409   ;;  %vm546_vm1 = vcmask 1042434  }
  0x47   : > { %311 = vmatpush.msra.mxu0 %v310_v0  ;;  %1180 = vmatpush.msra.mxu1 %v310_v0  ;;  %v308_v2 = vld [vmem:[#allocation7 + $0x68] sm:$0xff]  ;;  %v307_v3 = vld [vmem:[#allocation7 + $0x60] sm:$0xff]  ;;  %v306_v4 = vld [vmem:[#allocation7 + $0x58] sm:$0xff]  ;;  %vm548_vm2 = vcmask 1043459   ;;  %vm550_vm3 = vcmask 1044484   ;;  %vm552_vm4 = vcmask 1045509  }
  0x48   : > { %1181 = vmatpush.msra.mxu2 %v310_v0  ;;  %1182 = vmatpush.msra.mxu3 %v310_v0  ;;  %v305_v5 = vld [vmem:[#allocation7 + $0x50] sm:$0xff]  ;;  %v304_v6 = vld [vmem:[#allocation7 + $0x48] sm:$0xff]  ;;  %v303_v7 = vld [vmem:[#allocation7 + $0x40] sm:$0xff]  ;;  %vm554_vm5 = vcmask 1046534   ;;  %vm556_vm6 = vcmask 1047559   ;;  %vm567_vm7 = vcmask 64512  }
  0x49   : > { %312 = vmatpush.msra.mxu0 %v309_v1  ;;  %1183 = vmatpush.msra.mxu1 %v309_v1  ;;  %v302_v8 = vld [vmem:[#allocation7 + $0x38] sm:$0xff]  ;;  %v301_v9 = vld [vmem:[#allocation7 + $0x30] sm:$0xff]  ;;  %v300_v10 = vld [vmem:[#allocation7 + $0x28] sm:$0xff]  ;;  %s1179_s14 = sshll.u32 %s1585_s19, 4  ;;  %s275_s13 = scalar_lea.vmem [#allocation8], %s1169_s27 }
  0x4a   : > { %1184 = vmatpush.msra.mxu2 %v309_v1  ;;  %1185 = vmatpush.msra.mxu3 %v309_v1  ;;  %v299_v11 = vld [vmem:[#allocation7 + $0x20] sm:$0xff]  ;;  %v298_v12 = vld [vmem:[#allocation7 + $0x18] sm:$0xff]  ;;  %v297_v13 = vld [vmem:[#allocation7 + $0x10] sm:$0xff]  ;;  %s1048_s19 = scalar_lea.hbm %s2088_s4, %s1179_s14  ;;  %s1049_s20 = sshll.u32 %s275_s13, 4  ;;  %s1050_s20 = int_to_ptr.vmem [resolvable:$true] %s1049_s20 }
  0x4b   : > { %313 = vmatpush.msra.mxu0 %v308_v2  ;;  %1186 = vmatpush.msra.mxu1 %v308_v2  ;;  %v296_v14 = vld [vmem:[#allocation7 + $0x8] sm:$0xff]  ;;  %v295_v15 = vld [vmem:[#allocation7] sm:$0xff]  ;;  %v1749_v24 = vld [vmem:[%s1696_s12 + $0x10] sm:$0xff]  ;;  %s1051_s23 = sshll.u32 %s1048_s19, 4  ;;  %s1037_s25 = scalar_lea.sflag [#allocation4], %s1692_s2  ;;  %s1052_s23 = int_to_ptr.hbm [resolvable:$true] %s1051_s23 }
  0x4c   : > { %1187 = vmatpush.msra.mxu2 %v308_v2  ;;  %1188 = vmatpush.msra.mxu3 %v308_v2  ;;  %v1717_v16 = vld [vmem:[%s1696_s12] sm:$0xff]  ;;  %v1733_v20 = vld [vmem:[%s1696_s12 + $0x8] sm:$0xff]  ;;  %v1752_v25 = vld [vmem:[%s1696_s12 + $0x50] sm:$0xff]  ;;  %s1471_s8 = sshra.s32 %s1052_s23, 4  ;;  %s1477_s28 = scalar_lea.hbm %s2088_s4, 32  ;;  %s1472_s8 = int_to_ptr.hbm [resolvable:$true] %s1471_s8 }
  0x4d   : > { %314 = vmatpush.msra.mxu0 %v307_v3  ;;  %1189 = vmatpush.msra.mxu1 %v307_v3  ;;  %v1720_v17 = vld [vmem:[%s1696_s12 + $0x20] sm:$0xff]  ;;  %v1736_v21 = vld [vmem:[%s1696_s12 + $0x28] sm:$0xff]  ;;  %v1755_v26 = vld [vmem:[%s1696_s12 + $0x30] sm:$0xff]  ;;  %s1473_s6 = scalar_lea.hbm %s1472_s8, 16  ;;  %p1478_p2 = scmp.lt.s32.totalorder %s1472_s8, %s2088_s4 }
  0x4e   : > { %1190 = vmatpush.msra.mxu2 %v307_v3  ;;  %1191 = vmatpush.msra.mxu3 %v307_v3  ;;  %v1723_v18 = vld [vmem:[%s1696_s12 + $0x40] sm:$0xff]  ;;  %v1739_v22 = vld [vmem:[%s1696_s12 + $0x48] sm:$0xff]  ;;  %v1759_v27 = vld [vmem:[%s1696_s12 + $0x70] sm:$0xff]  ;;  %p1474_p1 = scmp.ne.s32.totalorder %s1472_s8, %s1473_s6  ;;  %p1479_p10 = scmp.lt.s32.totalorder %s1477_s28, %s1473_s6 }
  0x4f   : > { %315 = vmatpush.msra.mxu0 %v306_v4  ;;  %1192 = vmatpush.msra.mxu1 %v306_v4  ;;  %v1727_v19 = vld [vmem:[%s1696_s12 + $0x60] sm:$0xff]  ;;  %v1743_v23 = vld [vmem:[%s1696_s12 + $0x68] sm:$0xff]  ;;  %v1765_v28 = vld [vmem:[%s1696_s12 + $0x18] sm:$0xff] }
  0x50   : > { %1193 = vmatpush.msra.mxu2 %v306_v4  ;;  %1194 = vmatpush.msra.mxu3 %v306_v4  ;;  %v1768_v29 = vld [vmem:[%s1696_s12 + $0x58] sm:$0xff]  ;;  %v1781_v32 = vld [vmem:[%s1706_s24] sm:$0xff]  ;;  %p1475_p4 = pnand %p1474_p1, %p1634_p7  ;;  %p1480_p11 = por %p1479_p10, %p1478_p2 }
  0x51   : > { %316 = vmatpush.msra.mxu0 %v305_v5  ;;  %1195 = vmatpush.msra.mxu1 %v305_v5  ;;  %v1771_v30 = vld [vmem:[%s1696_s12 + $0x38] sm:$0xff]  ;;  %v383_v33 = vrot.slane %v1781_v32, 4  ;;  %v394_v34 = vperm.slane %v1781_v32, 0  ;;  %v384_v41 = vrot.slane %v1781_v32, 5  ;;  %v380_v44 = vrot.slane %v1781_v32, 1 }
  0x52   : > { %1196 = vmatpush.msra.mxu2 %v305_v5  ;;  %1197 = vmatpush.msra.mxu3 %v305_v5  ;;  %v1775_v31 = vld [vmem:[%s1696_s12 + $0x78] sm:$0xff]  ;;  %v1795_v47 = vld [vmem:[%s2087_s3] ss:$0 sm:$0xff]  ;;  %v381_v55 = vrot.slane %v1781_v32, 2  ;;  %p1476_p8 = pneg %p1475_p4 }
  0x53   : > { %317 = vmatpush.msra.mxu0 %v304_v6  ;;  %1198 = vmatpush.msra.mxu1 %v304_v6  ;;  %v398_v35 = vperm.slane %v383_v33, 0  ;;  %v1786_v36 = vld [vmem:[%s1706_s24 + $0x8] sm:$0xff]  ;;  %v399_v45 = vperm.slane %v384_v41, 0  ;;  %v395_v52 = vperm.slane %v380_v44, 0  ;;  %v382_v33 = vrot.slane %v1781_v32, 3 }
  0x54   : > { %1199 = vmatpush.msra.mxu2 %v304_v6  ;;  %1200 = vmatpush.msra.mxu3 %v304_v6  ;;  %v390_v42 = vrot.slane %v1786_v36, 4  ;;  %v402_v43 = vperm.slane %v1786_v36, 0  ;;  %v391_v56 = vrot.slane %v1786_v36, 5  ;;  %v396_v62 = vperm.slane %v381_v55, 0  ;;  %p1481_p9 = pnand %p1480_p11, %p1476_p8 }
  0x55   : > { %318 = vmatpush.msra.mxu0 %v303_v7  ;;  %1201 = vmatpush.msra.mxu1 %v303_v7  ;;  %v387_v2 = vrot.slane %v1786_v36, 1  ;;  %v388_v5 = vrot.slane %v1786_v36, 2  ;;  %v389_v41 = vrot.slane %v1786_v36, 3  ;;  %v392_v55 = vrot.slane %v1786_v36, 6 }
  0x56   : > { %1202 = vmatpush.msra.mxu2 %v303_v7  ;;  %1203 = vmatpush.msra.mxu3 %v303_v7  ;;  %v406_v46 = vperm.slane %v390_v42, 0  ;;  %v407_v0 = vperm.slane %v391_v56, 0  ;;  %v397_v42 = vperm.slane %v382_v33, 0  ;;  %v393_v56 = vrot.slane %v1786_v36, 7 }
  0x57   : > { %319 = vmatpush.msra.mxu0 %v302_v8  ;;  %1204 = vmatpush.msra.mxu1 %v302_v8 }
  0x58   : > { %1205 = vmatpush.msra.mxu2 %v302_v8  ;;  %1206 = vmatpush.msra.mxu3 %v302_v8 }
  0x59   : > { %320 = vmatpush.msra.mxu0 %v301_v9  ;;  %1207 = vmatpush.msra.mxu1 %v301_v9 }
  0x5a   : > { %1208 = vmatpush.msra.mxu2 %v301_v9  ;;  %1209 = vmatpush.msra.mxu3 %v301_v9 }
  0x5b   : > { %321 = vmatpush.msra.mxu0 %v300_v10  ;;  %1210 = vmatpush.msra.mxu1 %v300_v10 }
  0x5c   : > { %1211 = vmatpush.msra.mxu2 %v300_v10  ;;  %1212 = vmatpush.msra.mxu3 %v300_v10 }
  0x5d   : > { %322 = vmatpush.msra.mxu0 %v299_v11  ;;  %1213 = vmatpush.msra.mxu1 %v299_v11 }
  0x5e   : > { %1214 = vmatpush.msra.mxu2 %v299_v11  ;;  %1215 = vmatpush.msra.mxu3 %v299_v11  ;;  %v403_v11 = vperm.slane %v387_v2, 0 }
  0x5f   : > { %323 = vmatpush.msra.mxu0 %v298_v12  ;;  %1216 = vmatpush.msra.mxu1 %v298_v12 }
  0x60   : > { %1217 = vmatpush.msra.mxu2 %v298_v12  ;;  %1218 = vmatpush.msra.mxu3 %v298_v12 }
  0x61   : > { %324 = vmatpush.msra.mxu0 %v297_v13  ;;  %1219 = vmatpush.msra.mxu1 %v297_v13 }
  0x62   : > { %1220 = vmatpush.msra.mxu2 %v297_v13  ;;  %1221 = vmatpush.msra.mxu3 %v297_v13 }
  0x63   : > { %325 = vmatpush.msra.mxu0 %v296_v14  ;;  %1222 = vmatpush.msra.mxu1 %v296_v14 }
  0x64   : > { %1223 = vmatpush.msra.mxu2 %v296_v14  ;;  %1224 = vmatpush.msra.mxu3 %v296_v14 }
  0x65   : > { %326 = vmatpush.msra.mxu0 %v295_v15  ;;  %1225 = vmatpush.msra.mxu1 %v295_v15 }
  0x66   : > { %1226 = vmatpush.msra.mxu2 %v295_v15  ;;  %327 = vmatmul.f32.vlgmr.msra.gmra.mxu0 %v1717_v16 }
  0x67   : > { %339 = vmatmul.f32.vlgmr.msra.gmra.mxu1 %v1720_v17  ;;  %351 = vmatmul.f32.vlgmr.msra.gmra.mxu2 %v1723_v18 }
  0x68   : > { %1227 = vmatpush.msra.mxu3 %v295_v15  ;;  %v404_v15 = vperm.slane %v388_v5, 0 }
  0x69   : > { %363 = vmatmul.f32.vlgmr.msra.gmra.mxu3 %v1727_v19 }
  0x6e   : > { %330 = vmatmul.f32.gmra.mxu0 %v1733_v20 }
  0x6f   : > { %342 = vmatmul.f32.gmra.mxu1 %v1736_v21  ;;  %354 = vmatmul.f32.gmra.mxu2 %v1739_v22 }
  0x71   : > { %366 = vmatmul.f32.gmra.mxu3 %v1743_v23 }
  0x76   : > { %333 = vmatmul.f32.gmra.mxu0 %v1749_v24 }
  0x77   : > { %357 = vmatmul.f32.gmra.mxu2 %v1752_v25  ;;  %345 = vmatmul.f32.gmra.mxu1 %v1755_v26 }
  0x79   : > { %369 = vmatmul.f32.gmra.mxu3 %v1759_v27 }
  0x7e   : > { %336 = vmatmul.f32.gmra.mxu0 %v1765_v28 }
  0x7f   : > { %360 = vmatmul.f32.gmra.mxu2 %v1768_v29  ;;  %348 = vmatmul.f32.gmra.mxu1 %v1771_v30 }
  0x81   : > { %372 = vmatmul.f32.gmra.mxu3 %v1775_v31 }
  0xe3   : > { %v328_v37 = vpop.f32.mrf.mxu0 }
  0xe4   : > { %v426_v38 = vadd.f32 %v394_v34, %v328_v37  ;;  %v340_v39 = vpop.f32.mrf.mxu1 }
  0xe5   : > { %v430_v40 = vadd.f32 %v398_v35, %v340_v39 }
  0xe6   : > { %1299 = vtanh.f32 %v426_v38  ;;  %v385_v38 = vrot.slane %v1781_v32, 6 }
  0xe7   : > { %1301 = vtanh.f32 %v430_v40 }
  0xea   : > { %v352_v48 = vpop.f32.mrf.mxu2 }
  0xeb   : > { %v434_v49 = vadd.f32 %v402_v43, %v352_v48  ;;  %v331_v50 = vpop.f32.mrf.mxu0 }
  0xec   : > { %v1300_v51 = vpop.eup %1299  ;;  %v343_v53 = vpop.f32.mrf.mxu1  ;;  %v427_v63 = vadd.f32 %v395_v52, %v331_v50  ;;  %v400_v50 = vperm.slane %v385_v38, 0 }
  0xed   : > { %v364_v54 = vpop.f32.mrf.mxu3  ;;  %v1302_v57 = vpop.eup %1301  ;;  %1303 = vtanh.f32 %v434_v49  ;;  %v431_v58 = vadd.f32 %v399_v45, %v343_v53  ;;  %v462_v60 = vmul.f32 %v1300_v51, %v1795_v47  ;;  %v386_v49 = vrot.slane %v1781_v32, 7 }
  0xee   : > { %v438_v59 = vadd.f32 %v406_v46, %v364_v54  ;;  %v466_v61 = vmul.f32 %v1302_v57, %v1795_v47  ;;  %v405_v53 = vperm.slane %v389_v41, 0 }
  0xef   : > { %1305 = vtanh.f32 %v431_v58  ;;  %478 = vadd.xlane.f32.xlu0 %v462_v60  ;;  %v401_v57 = vperm.slane %v386_v49, 0 }
  0xf0   : > { %1307 = vtanh.f32 %v438_v59  ;;  %486 = vadd.xlane.f32.xlu2 %v466_v61 }
  0xf1   : > { %1309 = vtanh.f32 %v427_v63 }
  0xf2   : > { %v355_v1 = vpop.f32.mrf.mxu2 }
  0xf3   : > { %v1304_v3 = vpop.eup %1303  ;;  %v334_v4 = vpop.f32.mrf.mxu0  ;;  %v435_v35 = vadd.f32 %v403_v11, %v355_v1 }
  0xf4   : > { %v428_v6 = vadd.f32 %v396_v62, %v334_v4  ;;  %v470_v12 = vmul.f32 %v1304_v3, %v1795_v47  ;;  %v346_v34 = vpop.f32.mrf.mxu1  ;;  %v408_v62 = vperm.slane %v392_v55, 0 }
  0xf5   : > { %v367_v7 = vpop.f32.mrf.mxu3  ;;  %v1306_v8 = vpop.eup %1305  ;;  %v432_v58 = vadd.f32 %v400_v50, %v346_v34 }
  0xf6   : > { %v439_v9 = vadd.f32 %v407_v0, %v367_v7  ;;  %v1308_v10 = vpop.eup %1307  ;;  %1311 = vtanh.f32 %v428_v6  ;;  %v467_v13 = vmul.f32 %v1306_v8, %v1795_v47  ;;  %v409_v0 = vperm.slane %v393_v56, 0 }
  0xf7   : > { %v474_v14 = vmul.f32 %v1308_v10, %v1795_v47  ;;  %v1310_v39 = vpop.eup %1309 }
  0xf8   : > { %1313 = vtanh.f32 %v439_v9  ;;  %494 = vadd.xlane.f32.xlu2 %v470_v12  ;;  %488 = vadd.xlane.f32.xlu1 %v467_v13  ;;  %v463_v52 = vmul.f32 %v1310_v39, %v1795_v47 }
  0xf9   : > { %502 = vadd.xlane.f32.xlu0 %v474_v14 }
  0xfa   : > { %v358_v37 = vpop.f32.mrf.mxu2 }
  0xfb   : > { %v436_v40 = vadd.f32 %v404_v15, %v358_v37  ;;  %v337_v44 = vpop.f32.mrf.mxu0 }
  0xfc   : > { %v1312_v43 = vpop.eup %1311  ;;  %v429_v54 = vadd.f32 %v397_v42, %v337_v44  ;;  %v349_v60 = vpop.f32.mrf.mxu1 }
  0xfd   : > { %v370_v45 = vpop.f32.mrf.mxu3  ;;  %1315 = vtanh.f32 %v436_v40  ;;  %v464_v48 = vmul.f32 %v1312_v43, %v1795_v47  ;;  %v433_v1 = vadd.f32 %v401_v57, %v349_v60 }
  0xfe   : > { %v1314_v46 = vpop.eup %1313  ;;  %1317 = vtanh.f32 %v435_v35  ;;  %v440_v4 = vadd.f32 %v408_v62, %v370_v45 }
  0xff   : > { %v475_v51 = vmul.f32 %v1314_v46, %v1795_v47  ;;  %1319 = vtanh.f32 %v429_v54 }
 0x100   : > { %482 = vadd.xlane.f32.xlu1 %v464_v48 }
 0x101   : > { %504 = vadd.xlane.f32.xlu2 %v475_v51  ;;  %480 = vadd.xlane.f32.xlu0 %v463_v52 }
 0x102   : > { %v361_v59 = vpop.f32.mrf.mxu2 }
 0x103   : > { %v1316_v32 = vpop.eup %1315  ;;  %v437_v61 = vadd.f32 %v405_v53, %v361_v59 }
 0x104   : > { %v1318_v63 = vpop.eup %1317  ;;  %v472_v3 = vmul.f32 %v1316_v32, %v1795_v47 }
 0x105   : > { %1321 = vtanh.f32 %v437_v61  ;;  %v373_v2 = vpop.f32.mrf.mxu3  ;;  %v471_v36 = vmul.f32 %v1318_v63, %v1795_v47  ;;  %v1320_v6 = vpop.eup %1319 }
 0x106   : > { %1323 = vtanh.f32 %v432_v58  ;;  %v441_v5 = vadd.f32 %v409_v0, %v373_v2  ;;  %v465_v10 = vmul.f32 %v1320_v6, %v1795_v47 }
 0x107   : > { %1325 = vtanh.f32 %v433_v1 }
 0x108   : > { %498 = vadd.xlane.f32.xlu1 %v472_v3  ;;  %1327 = vtanh.f32 %v440_v4 }
 0x109   : > { %496 = vadd.xlane.f32.xlu0 %v471_v36  ;;  %1329 = vtanh.f32 %v441_v5 }
 0x10b   : > { %v1322_v7 = vpop.eup %1321 }
 0x10c   : > { %v1324_v8 = vpop.eup %1323  ;;  %v473_v9 = vmul.f32 %v1322_v7, %v1795_v47 }
 0x10d   : > { %v1326_v11 = vpop.eup %1325  ;;  %v468_v12 = vmul.f32 %v1324_v8, %v1795_v47 }
 0x10e   : > { %500 = vadd.xlane.f32.xlu2 %v473_v9  ;;  %v1328_v13 = vpop.eup %1327  ;;  %v469_v15 = vmul.f32 %v1326_v11, %v1795_v47 }
 0x10f   : > { %v1330_v14 = vpop.eup %1329  ;;  %v476_v33 = vmul.f32 %v1328_v13, %v1795_v47 }
 0x110   : > { %484 = vadd.xlane.f32.xlu1 %v465_v10  ;;  %v477_v34 = vmul.f32 %v1330_v14, %v1795_v47  ;;  %v526_v47 = vlaneseq }
 0x111   : > { %490 = vadd.xlane.f32.xlu0 %v468_v12 }
 0x112   : > { %v1841_v45 = vand.u32 127, %v526_v47 }
 0x116   : > { %492 = vadd.xlane.f32.xlu2 %v469_v15 }
 0x118   : > { %506 = vadd.xlane.f32.xlu1 %v476_v33 }
 0x119   : > { %508 = vadd.xlane.f32.xlu0 %v477_v34 }
 0x162   : > { %v1823_v35 = vpop.xlane.xlu0 %478 }
 0x163   : > { %v1825_v37 = vpop.xlane.xlu2 %486  ;;  %v528_v50 = vperm.slane %v1823_v35, %v1841_v45 }
 0x164   : > { %v532_v32 = vperm.slane %v1825_v37, %v1841_v45 }
 0x16b   : > { %v1827_v38 = vpop.xlane.xlu1 %488  ;;  %v1831_v40 = vpop.xlane.xlu2 %494 }
 0x16c   : > { %v1829_v39 = vpop.xlane.xlu0 %502  ;;  %v536_v51 = vperm.slane %v1831_v40, %v1841_v45  ;;  %v533_v62 = vperm.slane %v1827_v38, %v1841_v45 }
 0x16d   : > { %v540_v3 = vperm.slane %v1829_v39, %v1841_v45 }
 0x173   : > { %v1833_v41 = vpop.xlane.xlu1 %482 }
 0x174   : > { %v1835_v42 = vpop.xlane.xlu0 %480  ;;  %v1837_v43 = vpop.xlane.xlu2 %504  ;;  %v530_v52 = vperm.slane %v1833_v41, %v1841_v45 }
 0x175   : > { %v529_v48 = vperm.slane %v1835_v42, %v1841_v45  ;;  %v541_v8 = vperm.slane %v1837_v43, %v1841_v45 }
 0x177   : > { %v545_v54 = vsel %vm544_vm0, %v529_v48, %v528_v50 }
 0x178   : > { %v547_v61 = vsel %vm546_vm1, %v530_v52, %v545_v54 }
 0x17b   : > { %v1839_v44 = vpop.xlane.xlu1 %498 }
 0x17c   : > { %v1843_v46 = vpop.xlane.xlu0 %496  ;;  %v538_v55 = vperm.slane %v1839_v44, %v1841_v45 }
 0x17d   : > { %v537_v49 = vperm.slane %v1843_v46, %v1841_v45 }
 0x17f   : > { %v558_v56 = vsel %vm544_vm0, %v537_v49, %v536_v51  ;;  %v1536_v49 = vmov 0  }
 0x180   : > { %v559_v63 = vsel %vm546_vm1, %v538_v55, %v558_v56  ;;  %1297 = vset.pattern.permute.xlu2 %v1536_v49  ;;  %1296 = vset.pattern.permute.xlu1 %v1536_v49 }
 0x181   : > { %v1855_v53 = vpop.xlane.xlu2 %500  ;;  %1295 = vset.pattern.permute.xlu0 %v1536_v49 }
 0x182   : > { %v539_v57 = vperm.slane %v1855_v53, %v1841_v45 }
 0x183   : > { %v485_v58 = vpop.xlane.xlu1 %484 }
 0x184   : > { %v1863_v59 = vpop.xlane.xlu0 %490  ;;  %v531_v60 = vperm.slane %v485_v58, %v1841_v45  ;;  %v560_v1 = vsel %vm548_vm2, %v539_v57, %v559_v63 }
 0x185   : > { %v534_v36 = vperm.slane %v1863_v59, %v1841_v45  ;;  %v561_v7 = vsel %vm550_vm3, %v540_v3, %v560_v1 }
 0x186   : > { %v549_v0 = vsel %vm548_vm2, %v531_v60, %v547_v61  ;;  %v562_v33 = vsel %vm552_vm4, %v541_v8, %v561_v7 }
 0x187   : > { %v551_v2 = vsel %vm550_vm3, %v532_v32, %v549_v0 }
 0x188   : > { %v553_v4 = vsel %vm552_vm4, %v533_v62, %v551_v2 }
 0x189   : > { %v493_v5 = vpop.xlane.xlu2 %492  ;;  %v555_v10 = vsel %vm554_vm5, %v534_v36, %v553_v4 }
 0x18a   : > { %v535_v6 = vperm.slane %v493_v5, %v1841_v45 }
 0x18b   : > { %v1884_v9 = vpop.xlane.xlu1 %506 }
 0x18c   : > { %v542_v11 = vperm.slane %v1884_v9, %v1841_v45  ;;  %v1889_v12 = vpop.xlane.xlu0 %508  ;;  %v557_v13 = vsel %vm556_vm6, %v535_v6, %v555_v10 }
 0x18d   : > { %v543_v14 = vperm.slane %v1889_v12, %v1841_v45  ;;  %v568_v15 = vsel %vm567_vm7, %v557_v13, -inf }
 0x18e   : > { %569 = vmax.xlane.f32.xlu1 %v568_v15  ;;  %v563_v34 = vsel %vm554_vm5, %v542_v11, %v562_v33 }
 0x18f   : > { %v564_v47 = vsel %vm556_vm6, %v543_v14, %v563_v34 }
 0x190   : > { %v571_v48 = vsel %vm567_vm7, %v564_v47, -inf }
 0x191   : > { %572 = vmax.xlane.f32.xlu2 %v571_v48 }
 0x201   : > { %v570_v50 = vpop.xlane.xlu1 %569 }
 0x202   : > { %v578_v51 = vperm.slane %v570_v50, 2  ;;  %v577_v52 = vperm.slane %v570_v50, 1  ;;  %v576_v54 = vperm.slane %v570_v50, 0  ;;  %v579_v60 = vperm.slane %v570_v50, 3 }
 0x203   : > { %v580_v32 = vperm.slane %v570_v50, 4  ;;  %v583_v61 = vperm.slane %v570_v50, 7  ;;  %v581_v36 = vperm.slane %v570_v50, 5  ;;  %v582_v6 = vperm.slane %v570_v50, 6 }
 0x204   : > { %v610_v55 = vsub.f32 %v1833_v41, %v578_v51  ;;  %v609_v56 = vsub.f32 %v1835_v42, %v577_v52  ;;  %v608_v57 = vsub.f32 %v1823_v35, %v576_v54  ;;  %v611_v1 = vsub.f32 %v485_v58, %v579_v60  ;;  %v1903_v4 = vpop.xlane.xlu2 %572 }
 0x205   : > { %v612_v2 = vsub.f32 %v1825_v37, %v580_v32  ;;  %v615_v3 = vsub.f32 %v493_v5, %v583_v61  ;;  %v586_v8 = vperm.slane %v1903_v4, 2  ;;  %v613_v37 = vsub.f32 %v1827_v38, %v581_v36 }
 0x206   : > { %v628_v62 = vmul.f32 1.442695, %v610_v55  ;;  %v626_v63 = vmul.f32 1.442695, %v609_v56  ;;  %v624_v0 = vmul.f32 1.442695, %v608_v57  ;;  %v614_v5 = vsub.f32 %v1863_v59, %v582_v6 }
 0x207   : > { %v630_v41 = vmul.f32 1.442695, %v611_v1  ;;  %v632_v42 = vmul.f32 1.442695, %v612_v2  ;;  %v638_v7 = vmul.f32 1.442695, %v615_v3  ;;  %v618_v11 = vsub.f32 %v1839_v44, %v586_v8 }
 0x208   : > { %1331 = vpow2.f32 %v628_v62  ;;  %v634_v13 = vmul.f32 1.442695, %v613_v37  ;;  %v584_v14 = vperm.slane %v1903_v4, 0  ;;  %v636_v15 = vmul.f32 1.442695, %v614_v5 }
 0x209   : > { %1333 = vpow2.f32 %v626_v63  ;;  %v585_v33 = vperm.slane %v1903_v4, 1  ;;  %v644_v47 = vmul.f32 1.442695, %v618_v11  ;;  %v589_v48 = vperm.slane %v1903_v4, 5 }
 0x20a   : > { %1335 = vpow2.f32 %v624_v0  ;;  %v616_v44 = vsub.f32 %v1831_v40, %v584_v14  ;;  %v587_v52 = vperm.slane %v1903_v4, 3  ;;  %v588_v55 = vperm.slane %v1903_v4, 4 }
 0x20b   : > { %1337 = vpow2.f32 %v630_v41  ;;  %v617_v59 = vsub.f32 %v1843_v46, %v585_v33  ;;  %v621_v50 = vsub.f32 %v1837_v43, %v589_v48  ;;  %v590_v61 = vperm.slane %v1903_v4, 6 }
 0x20c   : > { %1339 = vpow2.f32 %v632_v42  ;;  %v640_v51 = vmul.f32 1.442695, %v616_v44  ;;  %v619_v43 = vsub.f32 %v1855_v53, %v587_v52  ;;  %v620_v46 = vsub.f32 %v1829_v39, %v588_v55 }
 0x20d   : > { %1341 = vpow2.f32 %v638_v7  ;;  %v642_v54 = vmul.f32 1.442695, %v617_v59  ;;  %v650_v57 = vmul.f32 1.442695, %v621_v50  ;;  %v591_v63 = vperm.slane %v1903_v4, 7 }
 0x20e   : > { %v1905_v35 = vpop.eup %1331  ;;  %1343 = vpow2.f32 %v634_v13  ;;  %v646_v32 = vmul.f32 1.442695, %v619_v43  ;;  %v648_v62 = vmul.f32 1.442695, %v620_v46  ;;  %v622_v39 = vsub.f32 %v1884_v9, %v590_v61 }
 0x20f   : > { %v1908_v10 = vpop.eup %1333  ;;  %679 = vperm.xlu2 %1297, %v1905_v35   ;;  %1345 = vpow2.f32 %v636_v15  ;;  %v623_v53 = vsub.f32 %v1889_v12, %v591_v63 }
 0x210   : > { %v1911_v58 = vpop.eup %1335  ;;  %676 = vperm.xlu1 %1296, %v1908_v10   ;;  %1347 = vpow2.f32 %v644_v47  ;;  %v652_v3 = vmul.f32 1.442695, %v622_v39 }
 0x211   : > { %673 = vperm.xlu0 %1295, %v1911_v58   ;;  %v1920_v34 = vpop.eup %1337  ;;  %1349 = vpow2.f32 %v640_v51  ;;  %v654_v4 = vmul.f32 1.442695, %v623_v53 }
 0x212   : > { %v1923_v38 = vpop.eup %1339  ;;  %1351 = vpow2.f32 %v642_v54 }
 0x213   : > { %v1926_v49 = vpop.eup %1341  ;;  %1353 = vpow2.f32 %v650_v57 }
 0x214   : > { %v1935_v56 = vpop.eup %1343  ;;  %1355 = vpow2.f32 %v646_v32 }
 0x215   : > { %v1937_v60 = vpop.eup %1345  ;;  %1357 = vpow2.f32 %v648_v62 }
 0x216   : > { %v1940_v40 = vpop.eup %1347  ;;  %1359 = vpow2.f32 %v652_v3 }
 0x217   : > { %682 = vperm.xlu2 %1297, %v1920_v34   ;;  %v1948_v0 = vpop.eup %1349  ;;  %1361 = vpow2.f32 %v654_v4 }
 0x218   : > { %685 = vperm.xlu1 %1296, %v1923_v38   ;;  %v1950_v1 = vpop.eup %1351 }
 0x219   : > { %694 = vperm.xlu0 %1295, %v1926_v49   ;;  %v1953_v2 = vpop.eup %1353 }
 0x21a   : > { %v1959_v41 = vpop.eup %1355 }
 0x21b   : > { %v1961_v36 = vpop.eup %1357 }
 0x21c   : > { %v1965_v42 = vpop.eup %1359 }
 0x21d   : > { %v1967_v9 = vpop.eup %1361 }
 0x21f   : > { %688 = vperm.xlu2 %1297, %v1935_v56  }
 0x220   : > { %691 = vperm.xlu1 %1296, %v1937_v60  }
 0x221   : > { %703 = vperm.xlu0 %1295, %v1940_v40  }
 0x227   : > { %697 = vperm.xlu2 %1297, %v1948_v0  }
 0x228   : > { %700 = vperm.xlu1 %1296, %v1950_v1  }
 0x229   : > { %712 = vperm.xlu0 %1295, %v1953_v2  }
 0x22f   : > { %706 = vperm.xlu2 %1297, %v1959_v41  }
 0x230   : > { %709 = vperm.xlu1 %1296, %v1961_v36  }
 0x237   : > { %715 = vperm.xlu2 %1297, %v1965_v42  }
 0x238   : > { %718 = vperm.xlu1 %1296, %v1967_v9  }
 0x269   : > { %v680_v12 = vpop.permute.xlu2 %679 }
 0x26a   : > { %v722_v15 = vperm.slane %v680_v12, %v1841_v45 }
 0x271   : > { %v683_v6 = vpop.permute.xlu2 %682 }
 0x272   : > { %v723_v48 = vperm.slane %v683_v6, %v1841_v45 }
 0x279   : > { %v689_v11 = vpop.permute.xlu2 %688 }
 0x27a   : > { %v725_v51 = vperm.slane %v689_v11, %v1841_v45 }
 0x281   : > { %v698_v54 = vpop.permute.xlu2 %697 }
 0x282   : > { %v677_v7 = vpop.permute.xlu1 %676  ;;  %v728_v53 = vperm.slane %v698_v54, %v1841_v45 }
 0x283   : > { %v674_v8 = vpop.permute.xlu0 %673  ;;  %v721_v37 = vperm.slane %v677_v7, %v1841_v45 }
 0x284   : > { %v720_v5 = vperm.slane %v674_v8, %v1841_v45 }
 0x286   : > { %v736_v13 = vsel %vm544_vm0, %v721_v37, %v720_v5 }
 0x287   : > { %v737_v33 = vsel %vm546_vm1, %v722_v15, %v736_v13 }
 0x288   : > { %v738_v44 = vsel %vm548_vm2, %v723_v48, %v737_v33 }
 0x289   : > { %v707_v3 = vpop.permute.xlu2 %706 }
 0x28a   : > { %v686_v14 = vpop.permute.xlu1 %685  ;;  %v731_v8 = vperm.slane %v707_v3, %v1841_v45 }
 0x28b   : > { %v724_v47 = vperm.slane %v686_v14, %v1841_v45  ;;  %v695_v59 = vpop.permute.xlu0 %694 }
 0x28c   : > { %v727_v57 = vperm.slane %v695_v59, %v1841_v45 }
 0x28d   : > { %v739_v50 = vsel %vm550_vm3, %v724_v47, %v738_v44 }
 0x28e   : > { %v740_v43 = vsel %vm552_vm4, %v725_v51, %v739_v50 }
 0x291   : > { %v716_v14 = vpop.permute.xlu2 %715 }
 0x292   : > { %v692_v52 = vpop.permute.xlu1 %691  ;;  %v734_v47 = vperm.slane %v716_v14, %v1841_v45 }
 0x293   : > { %v726_v55 = vperm.slane %v692_v52, %v1841_v45  ;;  %v704_v62 = vpop.permute.xlu0 %703 }
 0x294   : > { %v730_v12 = vperm.slane %v704_v62, %v1841_v45 }
 0x295   : > { %v741_v46 = vsel %vm554_vm5, %v726_v55, %v740_v43 }
 0x296   : > { %v742_v32 = vsel %vm556_vm6, %v727_v57, %v741_v46 }
 0x297   : > { %v752_v61 = vsel %vm567_vm7, %v742_v32, 0.0 }
 0x298   : > { %753 = vadd.xlane.f32.xlu0 %v752_v61 }
 0x29a   : > { %v701_v63 = vpop.permute.xlu1 %700 }
 0x29b   : > { %v729_v39 = vperm.slane %v701_v63, %v1841_v45  ;;  %v713_v5 = vpop.permute.xlu0 %712 }
 0x29c   : > { %v733_v15 = vperm.slane %v713_v5, %v1841_v45 }
 0x29d   : > { %v743_v4 = vsel %vm544_vm0, %v729_v39, %v728_v53 }
 0x29e   : > { %v744_v6 = vsel %vm546_vm1, %v730_v12, %v743_v4 }
 0x29f   : > { %v745_v11 = vsel %vm548_vm2, %v731_v8, %v744_v6 }
 0x2a2   : > { %v710_v7 = vpop.permute.xlu1 %709 }
 0x2a3   : > { %v732_v37 = vperm.slane %v710_v7, %v1841_v45 }
 0x2a5   : > { %v746_v13 = vsel %vm550_vm3, %v732_v37, %v745_v11 }
 0x2a6   : > { %v747_v33 = vsel %vm552_vm4, %v733_v15, %v746_v13 }
 0x2a7   : > { %v748_v59 = vsel %vm554_vm5, %v734_v47, %v747_v33 }
 0x2aa   : > { %v719_v48 = vpop.permute.xlu1 %718 }
 0x2ab   : > { %v735_v44 = vperm.slane %v719_v48, %v1841_v45 }
 0x2ad   : > { %v749_v50 = vsel %vm556_vm6, %v735_v44, %v748_v59 }
 0x2ae   : > { %v755_v51 = vsel %vm567_vm7, %v749_v50, 0.0 }
 0x2af   : > { %756 = vadd.xlane.f32.xlu2 %v755_v51 }
 0x30b   : > { %v754_v52 = vpop.xlane.xlu0 %753 }
 0x30c   : > { %1363 = vrcp.f32 %v754_v52 }
 0x312   : > { %v1364_v54 = vpop.eup %1363 }
 0x313   : > { %v768_v55 = vperm.slane %v1364_v54, 6  ;;  %v762_v57 = vperm.slane %v1364_v54, 0  ;;  %v763_v32 = vperm.slane %v1364_v54, 1  ;;  %v764_v61 = vperm.slane %v1364_v54, 2 }
 0x314   : > { %v765_v53 = vperm.slane %v1364_v54, 3  ;;  %v766_v7 = vperm.slane %v1364_v54, 4  ;;  %v767_v5 = vperm.slane %v1364_v54, 5  ;;  %v769_v15 = vperm.slane %v1364_v54, 7 }
 0x315   : > { %v800_v43 = vmul.f32 %v1937_v60, %v768_v55  ;;  %v794_v46 = vmul.f32 %v1911_v58, %v762_v57  ;;  %v795_v45 = vmul.f32 %v1908_v10, %v763_v32  ;;  %v796_v63 = vmul.f32 %v1905_v35, %v764_v61 }
 0x316   : > { %v797_v12 = vmul.f32 %v1920_v34, %v765_v53  ;;  %v798_v37 = vmul.f32 %v1923_v38, %v766_v7  ;;  %v799_v34 = vmul.f32 %v1935_v56, %v767_v5  ;;  %v801_v33 = vmul.f32 %v1926_v49, %v769_v15 }
 0x317   : > { %842 = vperm.xlu2 %1297, %v800_v43   ;;  %812 = vperm.xlu1 %1296, %v794_v46  }
 0x31f   : > { %817 = vperm.xlu1 %1296, %v795_v45  }
 0x322   : > { %v757_v62 = vpop.xlane.xlu2 %756 }
 0x323   : > { %1365 = vrcp.f32 %v757_v62 }
 0x327   : > { %822 = vperm.xlu1 %1296, %v796_v63  }
 0x329   : > { %v1366_v39 = vpop.eup %1365 }
 0x32a   : > { %v771_v3 = vperm.slane %v1366_v39, 1  ;;  %v770_v4 = vperm.slane %v1366_v39, 0  ;;  %v774_v10 = vperm.slane %v1366_v39, 4  ;;  %v777_v6 = vperm.slane %v1366_v39, 7 }
 0x32b   : > { %v772_v11 = vperm.slane %v1366_v39, 2  ;;  %v775_v38 = vperm.slane %v1366_v39, 5 }
 0x32c   : > { %v803_v60 = vmul.f32 %v1950_v1, %v771_v3  ;;  %v802_v58 = vmul.f32 %v1948_v0, %v770_v4  ;;  %v806_v8 = vmul.f32 %v1961_v36, %v774_v10  ;;  %v809_v35 = vmul.f32 %v1967_v9, %v777_v6 }
 0x32d   : > { %v776_v1 = vperm.slane %v1366_v39, 6  ;;  %v804_v13 = vmul.f32 %v1940_v40, %v772_v11  ;;  %v773_v36 = vperm.slane %v1366_v39, 3  ;;  %v807_v14 = vmul.f32 %v1953_v2, %v775_v38 }
 0x32e   : > { %857 = vperm.xlu0 %1295, %v803_v60   ;;  %852 = vperm.xlu2 %1297, %v802_v58  }
 0x32f   : > { %827 = vperm.xlu1 %1296, %v797_v12   ;;  %v808_v0 = vmul.f32 %v1965_v42, %v776_v1  ;;  %v805_v9 = vmul.f32 %v1959_v41, %v773_v36 }
 0x336   : > { %872 = vperm.xlu0 %1295, %v806_v8   ;;  %887 = vperm.xlu2 %1297, %v809_v35  }
 0x337   : > { %832 = vperm.xlu1 %1296, %v798_v37  }
 0x33e   : > { %882 = vperm.xlu0 %1295, %v808_v0  }
 0x33f   : > { %837 = vperm.xlu1 %1296, %v799_v34  }
 0x347   : > { %862 = vperm.xlu1 %1296, %v804_v13  }
 0x34f   : > { %867 = vperm.xlu1 %1296, %v805_v9  }
 0x357   : > { %877 = vperm.xlu1 %1296, %v807_v14  }
 0x35f   : > { %847 = vperm.xlu1 %1296, %v801_v33  }
 0x371   : > { %v843_v44 = vpop.permute.xlu2 %842 }
 0x372   : > { %v896_v4 = vmul.f32 %v843_v44, %v1755_v26 }
 0x388   : > { %v853_v50 = vpop.permute.xlu2 %852 }
 0x389   : > { %v813_v42 = vpop.permute.xlu1 %812  ;;  %v898_v55 = vmul.f32 %v853_v50, %v1723_v18 }
 0x38a   : > { %v890_v61 = vmul.f32 %v813_v42, %v1717_v16 }
 0x38b   : > { %v954_v46 = vrot.slane %v898_v55, 4 }
 0x38c   : > { %v906_v58 = vrot.slane %v890_v61, 4 }
 0x38d   : > { %v955_v60 = vadd.f32 %v954_v46, %v898_v55 }
 0x38e   : > { %v907_v5 = vadd.f32 %v906_v58, %v890_v61 }
 0x38f   : > { %v956_v37 = vrot.slane %v955_v60, 2 }
 0x390   : > { %v888_v57 = vpop.permute.xlu2 %887 }
 0x391   : > { %v818_v56 = vpop.permute.xlu1 %817  ;;  %v905_v62 = vmul.f32 %v888_v57, %v1775_v31  ;;  %v957_v33 = vadd.f32 %v956_v37, %v955_v60 }
 0x392   : > { %v891_v43 = vmul.f32 %v818_v56, %v1733_v20 }
 0x393   : > { %v996_v31 = vrot.slane %v905_v62, 4 }
 0x394   : > { %v912_v53 = vrot.slane %v891_v43, 4 }
 0x395   : > { %v997_v0 = vadd.f32 %v996_v31, %v905_v62 }
 0x396   : > { %v913_v7 = vadd.f32 %v912_v53, %v891_v43 }
 0x398   : > { %v914_v9 = vrot.slane %v913_v7, 2 }
 0x399   : > { %v823_v47 = vpop.permute.xlu1 %822 }
 0x39a   : > { %v892_v63 = vmul.f32 %v823_v47, %v1749_v24  ;;  %v908_v47 = vrot.slane %v907_v5, 2  ;;  %v915_v55 = vadd.f32 %v914_v9, %v913_v7 }
 0x39c   : > { %v918_v12 = vrot.slane %v892_v63, 4 }
 0x3a0   : > { %v858_v59 = vpop.permute.xlu0 %857 }
 0x3a1   : > { %v828_v48 = vpop.permute.xlu1 %827  ;;  %v899_v41 = vmul.f32 %v858_v59, %v1739_v22 }
 0x3a2   : > { %v893_v18 = vmul.f32 %v828_v48, %v1765_v28  ;;  %v998_v48 = vrot.slane %v997_v0, 2 }
 0x3a3   : > { %v960_v54 = vrot.slane %v899_v41, 4 }
 0x3a4   : > { %v924_v6 = vrot.slane %v893_v18, 4  ;;  %v999_v61 = vadd.f32 %v998_v48, %v997_v0 }
 0x3a5   : > { %v961_v39 = vadd.f32 %v960_v54, %v899_v41 }
 0x3a6   : > { %v925_v13 = vadd.f32 %v924_v6, %v893_v18 }
 0x3a8   : > { %v873_v52 = vpop.permute.xlu0 %872 }
 0x3a9   : > { %v833_v40 = vpop.permute.xlu1 %832  ;;  %v902_v22 = vmul.f32 %v873_v52, %v1727_v19  ;;  %v962_v19 = vrot.slane %v961_v39, 2 }
 0x3aa   : > { %v894_v3 = vmul.f32 %v833_v40, %v1720_v17 }
 0x3ab   : > { %v978_v24 = vrot.slane %v902_v22, 4  ;;  %v963_v11 = vadd.f32 %v962_v19, %v961_v39 }
 0x3ac   : > { %v930_v8 = vrot.slane %v894_v3, 4 }
 0x3ad   : > { %v979_v34 = vadd.f32 %v978_v24, %v902_v22  ;;  %v964_v50 = vrot.slane %v963_v11, 1 }
 0x3ae   : > { %v931_v38 = vadd.f32 %v930_v8, %v894_v3  ;;  %v916_v3 = vrot.slane %v915_v55, 1 }
 0x3af   : > { %v980_v59 = vrot.slane %v979_v34, 2  ;;  %v965_v39 = vadd.f32 %v964_v50, %v963_v11 }
 0x3b0   : > { %v883_v32 = vpop.permute.xlu0 %882 }
 0x3b1   : > { %v838_v51 = vpop.permute.xlu1 %837 }
 0x3b2   : > { %v895_v16 = vmul.f32 %v838_v51, %v1736_v21  ;;  %v919_v21 = vadd.f32 %v918_v12, %v892_v63  ;;  %v926_v51 = vrot.slane %v925_v13, 2  ;;  %v981_v63 = vadd.f32 %v980_v59, %v979_v34 }
 0x3b3   : > { %v1000_v12 = vrot.slane %v999_v61, 1 }
 0x3b4   : > { %v936_v1 = vrot.slane %v895_v16, 4  ;;  %v920_v44 = vrot.slane %v919_v21, 2  ;;  %v927_v18 = vadd.f32 %v926_v51, %v925_v13 }
 0x3b6   : > { %v937_v42 = vadd.f32 %v936_v1, %v895_v16  ;;  %v921_v62 = vadd.f32 %v920_v44, %v919_v21 }
 0x3b8   : > { %v938_v43 = vrot.slane %v937_v42, 2  ;;  %v922_v24 = vrot.slane %v921_v62, 1 }
 0x3b9   : > { %v863_v2 = vpop.permute.xlu1 %862 }
 0x3ba   : > { %v900_v49 = vmul.f32 %v863_v2, %v1752_v25  ;;  %v904_v25 = vmul.f32 %v883_v32, %v1759_v27  ;;  %v942_v27 = vrot.slane %v896_v4, 4  ;;  %v932_v2 = vrot.slane %v931_v38, 2 }
 0x3bb   : > { %v939_v60 = vadd.f32 %v938_v43, %v937_v42  ;;  %v923_v34 = vadd.f32 %v922_v24, %v921_v62 }
 0x3bc   : > { %v966_v45 = vrot.slane %v900_v49, 4  ;;  %v990_v17 = vrot.slane %v904_v25, 4 }
 0x3bd   : > { %v940_v1 = vrot.slane %v939_v60, 1 }
 0x3be   : > { %v967_v20 = vadd.f32 %v966_v45, %v900_v49  ;;  %v991_v14 = vadd.f32 %v990_v17, %v904_v25  ;;  %v958_v49 = vrot.slane %v957_v33, 1  ;;  %v909_v45 = vadd.f32 %v908_v47, %v907_v5 }
 0x3bf   : > { %v933_v25 = vadd.f32 %v932_v2, %v931_v38  ;;  %v917_v17 = vadd.f32 %v916_v3, %v915_v55 }
 0x3c0   : > { %v968_v35 = vrot.slane %v967_v20, 2  ;;  %v992_v57 = vrot.slane %v991_v14, 2  ;;  %v910_v31 = vrot.slane %v909_v45, 1 }
 0x3c1   : > { %v868_v10 = vpop.permute.xlu1 %867 }
 0x3c2   : > { %v901_v28 = vmul.f32 %v868_v10, %v1768_v29  ;;  %v969_v15 = vadd.f32 %v968_v35, %v967_v20  ;;  %v943_v29 = vadd.f32 %v942_v27, %v896_v4  ;;  %v993_v20 = vadd.f32 %v992_v57, %v991_v14 }
 0x3c3   : > { %v959_v4 = vadd.f32 %v958_v49, %v957_v33  ;;  %v982_v10 = vrot.slane %v981_v63, 1  ;;  %v934_v35 = vrot.slane %v933_v25, 1  ;;  %v911_v13 = vadd.f32 %v910_v31, %v909_v45 }
 0x3c4   : > { %v972_v26 = vrot.slane %v901_v28, 4  ;;  %v970_v54 = vrot.slane %v969_v15, 1  ;;  %v944_v22 = vrot.slane %v943_v29, 2  ;;  %v994_v27 = vrot.slane %v993_v20, 1 }
 0x3c5   : > { %v1025_v6 = vsel %vm544_vm0, %v965_v39, %v959_v4  ;;  %v983_v11 = vadd.f32 %v982_v10, %v981_v63  ;;  %v1001_v14 = vadd.f32 %v1000_v12, %v999_v61  ;;  %v1018_v42 = vsel %vm544_vm0, %v917_v17, %v911_v13 }
 0x3c6   : > { %v973_v36 = vadd.f32 %v972_v26, %v901_v28  ;;  %v928_v28 = vrot.slane %v927_v18, 1  ;;  %v945_v21 = vadd.f32 %v944_v22, %v943_v29  ;;  %v1019_v44 = vsel %vm546_vm1, %v923_v34, %v1018_v42 }
 0x3c8   : > { %v974_v56 = vrot.slane %v973_v36, 2  ;;  %v946_v29 = vrot.slane %v945_v21, 1 }
 0x3c9   : > { %v878_v40 = vpop.permute.xlu1 %877 }
 0x3ca   : > { %v975_v52 = vadd.f32 %v974_v56, %v973_v36  ;;  %v903_v41 = vmul.f32 %v878_v40, %v1743_v23  ;;  %v971_v23 = vadd.f32 %v970_v54, %v969_v15  ;;  %v929_v36 = vadd.f32 %v928_v28, %v927_v18 }
 0x3cb   : > { %v995_v15 = vadd.f32 %v994_v27, %v993_v20  ;;  %v941_v56 = vadd.f32 %v940_v1, %v939_v60  ;;  %v947_v2 = vadd.f32 %v946_v29, %v945_v21 }
 0x3cc   : > { %v976_v46 = vrot.slane %v975_v52, 1  ;;  %v984_v32 = vrot.slane %v903_v41, 4  ;;  %v1026_v37 = vsel %vm546_vm1, %v971_v23, %v1025_v6  ;;  %v1020_v40 = vsel %vm548_vm2, %v929_v36, %v1019_v44 }
 0x3ce   : > { %v985_v53 = vadd.f32 %v984_v32, %v903_v41  ;;  %v977_v16 = vadd.f32 %v976_v46, %v975_v52 }
 0x3d0   : > { %v986_v58 = vrot.slane %v985_v53, 2  ;;  %v1027_v26 = vsel %vm548_vm2, %v977_v16, %v1026_v37 }
 0x3d1   : > { %v848_v19 = vpop.permute.xlu1 %847  ;;  %v1028_v33 = vsel %vm550_vm3, %v983_v11, %v1027_v26 }
 0x3d2   : > { %v987_v7 = vadd.f32 %v986_v58, %v985_v53  ;;  %v897_v8 = vmul.f32 %v848_v19, %v1771_v30  ;;  %v935_v30 = vadd.f32 %v934_v35, %v933_v25 }
 0x3d4   : > { %v988_v5 = vrot.slane %v987_v7, 1  ;;  %v948_v0 = vrot.slane %v897_v8, 4  ;;  %v1021_v52 = vsel %vm550_vm3, %v935_v30, %v1020_v40 }
 0x3d5   : > { %v1022_v41 = vsel %vm552_vm4, %v941_v56, %v1021_v52 }
 0x3d6   : > { %v989_v9 = vadd.f32 %v988_v5, %v987_v7  ;;  %v949_v38 = vadd.f32 %v948_v0, %v897_v8  ;;  %v1023_v54 = vsel %vm554_vm5, %v947_v2, %v1022_v41 }
 0x3d8   : > { %v1029_v47 = vsel %vm552_vm4, %v989_v9, %v1028_v33  ;;  %v950_v48 = vrot.slane %v949_v38, 2 }
 0x3d9   : > { %v1030_v59 = vsel %vm554_vm5, %v995_v15, %v1029_v47 }
 0x3da   : > { %v1031_v50 = vsel %vm556_vm6, %v1001_v14, %v1030_v59  ;;  %v951_v51 = vadd.f32 %v950_v48, %v949_v38 }
 0x3db   : > { %1035 = vst [vmem:[%s275_s13 + $0x8] sm:$0xff] %v1031_v50 }
 0x3dc   : > { %v952_v55 = vrot.slane %v951_v51, 1 }
 0x3de   : > { %v953_v57 = vadd.f32 %v952_v55, %v951_v51 }
 0x3e0   : > { %v1024_v49 = vsel %vm556_vm6, %v953_v57, %v1023_v54 }
 0x3e1   : > { %1034 = vst [vmem:[%s275_s13] sm:$0xff] %v1024_v49 }
 0x3e2   : > { %1484 = shalt.err (!%p1481_p9)
}
 0x3e3   : > { %s1537_s2 = smov 128   ;;  %s1538_s27 = smov 8  }
 0x3e4   : > { %1236 = dma.vmem_to_hbm [thread:$0]  (%p1634_p7), %s1050_s20, 256, %s1052_s23, %s1037_s25, %s1537_s2, %s1537_s2, %s1538_s27  }
 0x3e5 PF: > { %s1066_s10 = sand.u32 1, %s1519_s15   ;;  %p2105_p12 = scmp.ge.s32.totalorder %s1531_s18, 2 }
 0x3e6   : > { %s1067_s24 = scalar_lea.sflag [#allocation4], %s1066_s10 }
 0x3e7   : > { %p1250_p13 = pnand %p2105_p12, %p1599_p6 }
 0x3e9   : > { %p1251_p0 = pneg %p1250_p13 }
 0x3eb   : > { %1514 = dma.done.wait (%p1251_p0), %s1067_s24, 256  }
 0x3ec   : > { %1516 = vsyncadd (%p1251_p0), %s1067_s24, 4294967040  ;;  %s2106_s21 = sld [smem:[#allocation13_spill]]  ;;  %p20_p3 = scmp.ge.s32.totalorder %s1617_s29, 4  }
 0x3ed   : > { %s2107_s17 = sld [smem:[#allocation14_spill]]  ;;  %s2108_s15 = smov %s1523_s16 }
 0x3ee   : > { %s2110_s18 = smov %s1617_s29  ;;  %22 = sbr.rel (!%p20_p3) target bundleno = 9 (0x9), region = 98 }
 0x3f2   : > { %s2109_s16 = smov %s2106_s21 }
 0x3f3   :  { %1073 = vsyncpa [#allocation3], 1 }
 0x3f4   :  { %1075 = vsyncpa [#allocation3 + $0x1], 1 }
 0x3f5   :  { %1076 = vsyncpa [#allocation6], 1 }
 0x3f6   :  { %1078 = vsyncpa [#allocation6 + $0x1], 1 }
 0x3f7   :  { %1079 = vsyncpa [#allocation4], 1 }
 0x3f8   :  { %1081 = vsyncpa [#allocation4 + $0x1], 1 }

</bundles_post_ra>
